<compile_context>
chip_gen: v6e
topology: v6e:2x2x1
jax: 0.10.0
libtpu: 0.0.40
codegen_flags: <defaults>
</compile_context>

<pallas_src>
import functools

import jax
import jax.numpy as jnp
from jax import lax
from jax.experimental import pallas as pl
from jax.experimental.pallas import tpu as pltpu

_F32_TEMPS = 6            # live (rows, C) f32 temporaries (conservative)
_NARROW_BYTES = 6 * 512   # live (rows, 1) f32 temporaries, lane-padded to 128
_MXU_MAX_C = 8192         # above this the resident (C,128) ones tile is too big


def _round_up(x, m):
    return ((x + m - 1) // m) * m


def _vmem_budget_bytes():
    """~80% of this chip's per-core VMEM, capped at 100 MiB.

    v5e/v6e (128 MiB) -> 100 MiB, v7x (64 MiB) -> ~51 MiB. Conservative
    fallback (if the query is unavailable) is the v7x figure.
    """
    cap = 64 << 20
    try:
        info = pltpu.get_tpu_info()
        cap = int(getattr(info, "vmem_capacity_bytes", cap))
    except Exception:
        pass
    return min((cap * 4) // 5, 100 << 20)


def _choose_block_rows(n, c, in_itemsize, budget, use_mxu):
    """Largest row tile (multiple of 8) that:
      (a) targets budget/8 bytes of f32 work per step (4..16 MiB),
      (b) fits the fully-accounted VMEM budget (shrinks gracefully for big C),
      (c) leaves >= 2 grid blocks when N > 8 so both v7x TensorCores run.
    """
    target_f32 = min(16 << 20, max(4 << 20, budget // 8))
    rows = target_f32 // (c * 4)

    per_row = (2 * c * in_itemsize      # double-buffered preds stream
               + _F32_TEMPS * c * 4     # wide (rows, C) f32 temporaries
               + 2 * 128 * 4            # (rows,1) int32 target block x2 bufs, lane-padded
               + _NARROW_BYTES)         # (rows,1) f32 temporaries, lane-padded
    fixed = 2 << 20                      # slack for compiler-internal scratch
    if use_mxu:
        per_row += 2 * 128 * 4           # two (rows,128) f32 matmul results
        fixed += 2 * c * 128 * 4         # resident ones tile (counted x2 to be safe)

    rows = min(rows, max(8, (budget - fixed) // per_row))
    rows = min(rows, 32768)
    if n > 8:                            # guarantee >= 2 blocks (v7x megacore)
        rows = min(rows, _round_up(-(-n // 2), 8))
    return int(max(8, (rows // 8) * 8))


def _ce_partial_kernel(*refs, total_rows, ignore_index, use_mxu):
    """Per-row-block partials: [sum_smooth, sum_nll, valid_count] -> lanes 0..2."""
    if use_mxu:
        preds_ref, tgt_ref, ones_ref, out_ref = refs
    else:
        preds_ref, tgt_ref, out_ref = refs

    i = pl.program_id(0)
    logits = preds_ref[...].astype(jnp.float32)             # (BN, C), f32 math
    bn, c = logits.shape

    # Row-validity mask (last block may run past N; garbage rows are discarded
    # via selects, never via arithmetic masking -> no NaN propagation).
    row_ids = i * bn + lax.broadcasted_iota(jnp.int32, (bn, 1), 0)
    in_range = row_ids < total_rows                          # (BN, 1) bool

    # Row-wise stable log-sum-exp. The two class-axis sums go to the idle MXU
    # (resident ones matmul) when enabled, freeing VALU/XLU for the stream.
    m = jnp.max(logits, axis=-1, keepdims=True)              # (BN, 1)
    p = jnp.exp(logits - m)                                   # (BN, C), EUP
    if use_mxu:
        ones = ones_ref[...]                                  # (C, 128) f32, resident
        se = jnp.dot(p, ones, preferred_element_type=jnp.float32)[:, :1]
        sum_logits = jnp.dot(logits, ones,
                             preferred_element_type=jnp.float32)[:, :1]
    else:
        se = jnp.sum(p, axis=-1, keepdims=True)
        sum_logits = jnp.sum(logits, axis=-1, keepdims=True)
    lse = m + jnp.log(se)                                     # (BN, 1)

    # -sum_j log_softmax(x)_j = C * lse - sum_j x_j   (masked to 0 off-range)
    smooth = jnp.where(in_range, c * lse - sum_logits, 0.0)

    # Gather the target logit via one-hot compare + max (no dynamic gather on
    # TPU). Lane iota is (1, C) and broadcast against the (BN, 1) target.
    # Out-of-range class indices (other than ignore_index) yield +inf nll
    # instead of PyTorch's error; ignore_index rows are excluded below.
    tgt = tgt_ref[...]                                        # (BN, 1) int32
    col = lax.broadcasted_iota(jnp.int32, (1, c), 1)
    picked = jnp.max(jnp.where(col == tgt, logits, -jnp.inf),
                     axis=-1, keepdims=True)                  # (BN, 1)

    valid = jnp.logical_and(tgt != ignore_index, in_range)    # (BN, 1)
    nll_rows = jnp.where(valid, lse - picked, 0.0)

    s_smooth = jnp.sum(smooth)
    s_nll = jnp.sum(nll_rows)
    s_cnt = jnp.sum(valid.astype(jnp.float32))

    # Single vector store of the three partials into lanes 0..2 of this
    # block's (1, 1, 128) output row.
    lane = lax.broadcasted_iota(jnp.int32, out_ref.shape, out_ref.ndim - 1)
    out_ref[...] = jnp.where(
        lane == 0, s_smooth,
        jnp.where(lane == 1, s_nll,
                  jnp.where(lane == 2, s_cnt, 0.0))).astype(jnp.float32)


def cross_entropy_pallas(preds, target, *, epsilon=0.1, ignore_index=-100,
                         block_rows=None, use_mxu=None):
    """preds: (N, C) float (f32 or bf16); target: (N,) int. Returns scalar f32.

    Note: if every row has target == ignore_index the result is NaN, matching
    PyTorch's nll_loss(reduction='mean') behavior.
    """
    n, c = preds.shape
    tgt2d = target.astype(jnp.int32).reshape(n, 1)

    if use_mxu is None:
        use_mxu = c <= _MXU_MAX_C
    budget = _vmem_budget_bytes()
    itemsize = jnp.dtype(preds.dtype).itemsize
    if block_rows is None:
        block_rows = _choose_block_rows(n, c, itemsize, budget, use_mxu)
    else:
        block_rows = int(max(8, (int(block_rows) // 8) * 8))
    num_blocks = pl.cdiv(n, block_rows)

    kernel = functools.partial(
        _ce_partial_kernel, total_rows=int(n),
        ignore_index=int(ignore_index), use_mxu=bool(use_mxu))

    in_specs = [
        pl.BlockSpec((block_rows, c), lambda i: (i, 0)),
        pl.BlockSpec((block_rows, 1), lambda i: (i, 0)),
    ]
    args = [preds, tgt2d]
    if use_mxu:
        # VMEM-resident f32 ones tile; constant index_map -> fetched once.
        in_specs.append(pl.BlockSpec((c, 128), lambda i: (0, 0)))
        args.append(jnp.ones((c, 128), jnp.float32))

    parts = pl.pallas_call(
        kernel,
        out_shape=jax.ShapeDtypeStruct((num_blocks, 1, 128), jnp.float32),
        grid=(num_blocks,),
        in_specs=in_specs,
        out_specs=pl.BlockSpec((1, 1, 128), lambda i: (i, 0, 0)),
        compiler_params=pltpu.CompilerParams(
            dimension_semantics=("parallel",),
            vmem_limit_bytes=int(budget)),
    )(*args)

    sums = jnp.sum(parts[:, 0, :3], axis=0)                 # (3,) f32
    loss_mean = sums[0] / n                                  # mean over ALL rows
    nll_mean = sums[1] / sums[2]                             # mean over valid rows
    eps = float(epsilon)
    return (eps * (loss_mean / c) + (1.0 - eps) * nll_mean).astype(jnp.float32)


def cross_entropy_ref(preds, target, *, epsilon=0.1, ignore_index=-100):
    """Pure-JAX reference matching the PyTorch module."""
    preds = preds.astype(jnp.float32)
    n_cls = preds.shape[-1]
    log_preds = jax.nn.log_softmax(preds, axis=-1)
    loss = jnp.mean(-log_preds.sum(axis=-1))
    valid = target != ignore_index
    safe_tgt = jnp.where(valid, target, 0)
    picked = jnp.take_along_axis(log_preds, safe_tgt.reshape(-1, 1), axis=-1)[:, 0]
    nll = jnp.sum(jnp.where(valid, -picked, 0.0)) / jnp.sum(valid)
    return epsilon * (loss / n_cls) + (1.0 - epsilon) * nll


if __name__ == "__main__":
    key = jax.random.PRNGKey(0)
    k1, k2, k3, k4, k5, k6 = jax.random.split(key, 6)

    # Case 1: f32 preds, 16 rows x 32 classes, one ignored row. Exercises the
    # MXU class-sum path and the >=2-block rule (two grid blocks).
    N, C = 16, 32
    preds = jax.random.normal(k1, (N, C), dtype=jnp.float32)
    target = jax.random.randint(k2, (N,), 0, C, dtype=jnp.int32).at[3].set(-100)
    out = jax.block_until_ready(cross_entropy_pallas(preds, target))
    ref = cross_entropy_ref(preds, target)
    assert jnp.allclose(out, ref, rtol=1e-5, atol=1e-5), (out, ref)

    # Case 2: bf16 preds (halved HBM traffic) and N not a multiple of the row
    # tile, exercising the in-kernel row mask.
    N2, C2 = 13, 32
    preds2 = jax.random.normal(k3, (N2, C2), jnp.float32).astype(jnp.bfloat16)
    target2 = jax.random.randint(k4, (N2,), 0, C2, dtype=jnp.int32).at[0].set(-100)
    out2 = jax.block_until_ready(cross_entropy_pallas(preds2, target2))
    ref2 = cross_entropy_ref(preds2.astype(jnp.float32), target2)
    assert jnp.allclose(out2, ref2, rtol=1e-4, atol=1e-4), (out2, ref2)

    # Case 3: VALU/XLU-reduction fallback path (use_mxu=False, as used for
    # vocab-scale C), three blocks with a partial last block.
    N3, C3 = 40, 48
    preds3 = jax.random.normal(k5, (N3, C3), dtype=jnp.float32)
    target3 = jax.random.randint(k6, (N3,), 0, C3, dtype=jnp.int32)
    out3 = jax.block_until_ready(
        cross_entropy_pallas(preds3, target3, use_mxu=False, block_rows=16))
    ref3 = cross_entropy_ref(preds3, target3)
    assert jnp.allclose(out3, ref3, rtol=1e-5, atol=1e-5), (out3, ref3)

    print("KERNEL_OK")
</pallas_src>

<mosaic_0001>
module attributes {stable_mosaic.version = 11 : i64} {
  func.func @_ce_partial_kernel(%arg0: i32, %arg1: memref<8x32xf32, #tpu.memory_space<vmem>>, %arg2: memref<8x1xi32, #tpu.memory_space<vmem>>, %arg3: memref<32x128xf32, #tpu.memory_space<vmem>>, %arg4: memref<1x1x128xf32, #tpu.memory_space<vmem>>) attributes {dimension_semantics = [#tpu.dimension_semantics<parallel>], iteration_bounds = array<i64: 2>, scalar_prefetch = 0 : i64, scratch_operands = 0 : i64, tpu.core_type = #tpu.core_type<tc>, window_params = [{transform_indices = @transform_0, window_bounds = array<i64: 8, 32>}, {transform_indices = @transform_1, window_bounds = array<i64: 8, 1>}, {pipeline_mode = #tpu.pipeline_mode<synchronous>, transform_indices = @transform_2, window_bounds = array<i64: 32, 128>}, {transform_indices = @transform_3, window_bounds = array<i64: 1, 1, 128>}]} {
    %c0 = arith.constant 0 : index
    %c0_0 = arith.constant 0 : index
    %0 = vector.load %arg1[%c0, %c0_0] : memref<8x32xf32, #tpu.memory_space<vmem>>, vector<8x32xf32>
    %c8_i32 = arith.constant 8 : i32
    %1 = arith.muli %arg0, %c8_i32 : i32
    %2 = tpu.iota {dimensions = array<i32: 0>} : vector<8x1xi32>
    %3 = vector.broadcast %1 : i32 to vector<8x1xi32>
    %4 = arith.addi %3, %2 : vector<8x1xi32>
    %c16_i32 = arith.constant 16 : i32
    %5 = vector.broadcast %c16_i32 : i32 to vector<8x1xi32>
    %6 = arith.cmpi slt, %4, %5 : vector<8x1xi32>
    %cst = arith.constant dense<0xFF800000> : vector<8xf32>
    %7 = vector.multi_reduction <maximumf>, %0, %cst [1] : vector<8x32xf32> to vector<8xf32>
    %8 = vector.shape_cast %7 : vector<8xf32> to vector<8x1xf32>
    %9 = vector.broadcast %8 : vector<8x1xf32> to vector<8x32xf32>
    %10 = arith.subf %0, %9 : vector<8x32xf32>
    %11 = math.exp %10 : vector<8x32xf32>
    %c0_1 = arith.constant 0 : index
    %c0_2 = arith.constant 0 : index
    %12 = vector.load %arg3[%c0_1, %c0_2] : memref<32x128xf32, #tpu.memory_space<vmem>>, vector<32x128xf32>
    %cst_3 = arith.constant dense<0.000000e+00> : vector<8x128xf32>
    %13 = tpu.matmul %11, %12, %cst_3 {dimension_numbers = #tpu.dot_dimension_numbers<[1], [0], [0], [1], [0, 0, 1, 1], [], []>} : vector<8x32xf32>, vector<32x128xf32>, vector<8x128xf32> -> vector<8x128xf32>
    %14 = vector.extract_strided_slice %13 {offsets = [0, 0], sizes = [8, 1], strides = [1, 1]} : vector<8x128xf32> to vector<8x1xf32>
    %cst_4 = arith.constant dense<0.000000e+00> : vector<8x128xf32>
    %15 = tpu.matmul %0, %12, %cst_4 {dimension_numbers = #tpu.dot_dimension_numbers<[1], [0], [0], [1], [0, 0, 1, 1], [], []>} : vector<8x32xf32>, vector<32x128xf32>, vector<8x128xf32> -> vector<8x128xf32>
    %16 = vector.extract_strided_slice %15 {offsets = [0, 0], sizes = [8, 1], strides = [1, 1]} : vector<8x128xf32> to vector<8x1xf32>
    %17 = math.log %14 : vector<8x1xf32>
    %18 = arith.addf %8, %17 : vector<8x1xf32>
    %cst_5 = arith.constant 3.200000e+01 : f32
    %19 = vector.broadcast %cst_5 : f32 to vector<8x1xf32>
    %20 = arith.mulf %19, %18 : vector<8x1xf32>
    %21 = arith.subf %20, %16 : vector<8x1xf32>
    %cst_6 = arith.constant 0.000000e+00 : f32
    %22 = vector.broadcast %cst_6 : f32 to vector<8x1xf32>
    %23 = arith.select %6, %21, %22 : vector<8x1xi1>, vector<8x1xf32>
    %c0_7 = arith.constant 0 : index
    %c0_8 = arith.constant 0 : index
    %24 = vector.load %arg2[%c0_7, %c0_8] : memref<8x1xi32, #tpu.memory_space<vmem>>, vector<8x1xi32>
    %25 = tpu.iota {dimensions = array<i32: 1>} : vector<1x32xi32>
    %26 = vector.broadcast %25 : vector<1x32xi32> to vector<8x32xi32>
    %27 = vector.broadcast %24 : vector<8x1xi32> to vector<8x32xi32>
    %28 = arith.cmpi eq, %26, %27 : vector<8x32xi32>
    %cst_9 = arith.constant 0xFF800000 : f32
    %29 = vector.broadcast %cst_9 : f32 to vector<8x32xf32>
    %30 = arith.select %28, %0, %29 : vector<8x32xi1>, vector<8x32xf32>
    %cst_10 = arith.constant dense<0xFF800000> : vector<8xf32>
    %31 = vector.multi_reduction <maximumf>, %30, %cst_10 [1] : vector<8x32xf32> to vector<8xf32>
    %32 = vector.shape_cast %31 : vector<8xf32> to vector<8x1xf32>
    %c-100_i32 = arith.constant -100 : i32
    %33 = vector.broadcast %c-100_i32 : i32 to vector<8x1xi32>
    %34 = arith.cmpi ne, %24, %33 : vector<8x1xi32>
    %35 = arith.andi %34, %6 : vector<8x1xi1>
    %36 = arith.subf %18, %32 : vector<8x1xf32>
    %cst_11 = arith.constant 0.000000e+00 : f32
    %37 = vector.broadcast %cst_11 : f32 to vector<8x1xf32>
    %38 = arith.select %35, %36, %37 : vector<8x1xi1>, vector<8x1xf32>
    %39 = vector.shape_cast %23 : vector<8x1xf32> to vector<1x8x1xf32>
    %cst_12 = arith.constant dense<0.000000e+00> : vector<1xf32>
    %40 = vector.multi_reduction <add>, %39, %cst_12 [1, 2] : vector<1x8x1xf32> to vector<1xf32>
    %41 = vector.shape_cast %40 : vector<1xf32> to vector<1x1x1xf32>
    %42 = vector.extract %41[0, 0, 0] : f32 from vector<1x1x1xf32>
    %43 = vector.shape_cast %38 : vector<8x1xf32> to vector<1x8x1xf32>
    %cst_13 = arith.constant dense<0.000000e+00> : vector<1xf32>
    %44 = vector.multi_reduction <add>, %43, %cst_13 [1, 2] : vector<1x8x1xf32> to vector<1xf32>
    %45 = vector.shape_cast %44 : vector<1xf32> to vector<1x1x1xf32>
    %46 = vector.extract %45[0, 0, 0] : f32 from vector<1x1x1xf32>
    %47 = arith.extui %35 : vector<8x1xi1> to vector<8x1xi32>
    %48 = arith.sitofp %47 : vector<8x1xi32> to vector<8x1xf32>
    %49 = vector.shape_cast %48 : vector<8x1xf32> to vector<1x8x1xf32>
    %cst_14 = arith.constant dense<0.000000e+00> : vector<1xf32>
    %50 = vector.multi_reduction <add>, %49, %cst_14 [1, 2] : vector<1x8x1xf32> to vector<1xf32>
    %51 = vector.shape_cast %50 : vector<1xf32> to vector<1x1x1xf32>
    %52 = vector.extract %51[0, 0, 0] : f32 from vector<1x1x1xf32>
    %53 = tpu.iota {dimensions = array<i32: 2>} : vector<1x1x128xi32>
    %c0_i32 = arith.constant 0 : i32
    %54 = vector.broadcast %c0_i32 : i32 to vector<1x1x128xi32>
    %55 = arith.cmpi eq, %53, %54 : vector<1x1x128xi32>
    %c1_i32 = arith.constant 1 : i32
    %56 = vector.broadcast %c1_i32 : i32 to vector<1x1x128xi32>
    %57 = arith.cmpi eq, %53, %56 : vector<1x1x128xi32>
    %c2_i32 = arith.constant 2 : i32
    %58 = vector.broadcast %c2_i32 : i32 to vector<1x1x128xi32>
    %59 = arith.cmpi eq, %53, %58 : vector<1x1x128xi32>
    %cst_15 = arith.constant 0.000000e+00 : f32
    %60 = vector.broadcast %52 : f32 to vector<1x1x128xf32>
    %61 = vector.broadcast %cst_15 : f32 to vector<1x1x128xf32>
    %62 = arith.select %59, %60, %61 : vector<1x1x128xi1>, vector<1x1x128xf32>
    %63 = vector.broadcast %46 : f32 to vector<1x1x128xf32>
    %64 = arith.select %57, %63, %62 : vector<1x1x128xi1>, vector<1x1x128xf32>
    %65 = vector.broadcast %42 : f32 to vector<1x1x128xf32>
    %66 = arith.select %55, %65, %64 : vector<1x1x128xi1>, vector<1x1x128xf32>
    %c0_16 = arith.constant 0 : index
    %c0_17 = arith.constant 0 : index
    %c0_18 = arith.constant 0 : index
    %67 = vector.load %arg4[%c0_16, %c0_17, %c0_18] : memref<1x1x128xf32, #tpu.memory_space<vmem>>, vector<1x1x128xf32>
    tpu.vector_store %arg4[%c0_16, %c0_17, %c0_18], %66 {strides = array<i32>} : memref<1x1x128xf32, #tpu.memory_space<vmem>>, vector<1x1x128xf32>,
    return
  }
  func.func @transform_0(%arg0: i32) -> (i32, i32) {
    %c0_i32 = arith.constant 0 : i32
    %c0_i32_0 = arith.constant 0 : i32
    return %arg0, %c0_i32 : i32, i32
  }
  func.func @transform_1(%arg0: i32) -> (i32, i32) {
    %c0_i32 = arith.constant 0 : i32
    %c0_i32_0 = arith.constant 0 : i32
    return %arg0, %c0_i32 : i32, i32
  }
  func.func @transform_2(%arg0: i32) -> (i32, i32) {
    %c0_i32 = arith.constant 0 : i32
    %c0_i32_0 = arith.constant 0 : i32
    %c0_i32_1 = arith.constant 0 : i32
    return %c0_i32, %c0_i32_0 : i32, i32
  }
  func.func @transform_3(%arg0: i32) -> (i32, i32, i32) {
    %c0_i32 = arith.constant 0 : i32
    %c0_i32_0 = arith.constant 0 : i32
    %c0_i32_1 = arith.constant 0 : i32
    return %arg0, %c0_i32, %c0_i32_0 : i32, i32, i32
  }
}

</mosaic_0001>

<bundles_post_ra>
// kernel: tpu_custom_call.1
= control target key start
LH: loop header
LB: loop body
LE: loop exit
PB: predicated region body
PF: predicated region fallthrough
CT: control target
= control target key end

     0   :  { %8 = vsyncpa [#allocation3], 0  ;;  %s887_s0 = inlined_call_operand.vmem [shape: f32[16,32], index: 0, kind: input, shape index: {}]   ;;  %s888_s1 = inlined_call_operand.vmem [shape: s32[16,1], index: 1, kind: input, shape index: {}]   ;;  %s889_s2 = inlined_call_operand.hbm [shape: f32[32,128], index: 2, kind: input, shape index: {}]   ;;  %s890_s3 = inlined_call_operand.hbm [shape: f32[2,1,128], index: 3, kind: output, shape index: {}]  }
   0x1   :  { %9 = vsyncpa [#allocation4], 0 }
   0x2   :  { %11 = vsyncpa [#allocation4 + $0x1], 0  ;;  %s749_s12 = smov 0   ;;  %s751_s13 = smov 0  }
   0x3   :  { %s753_s14 = smov 0   ;;  %s755_s15 = smov 0  }
   0x4 LB: > { %s770_s16 = sadd.s32 4294967295, %s720_s15   ;;  %s517_s17 = sadd.s32 4294967294, %s720_s15   ;;  %s720_s15 = sphi %s755_s15, %s898_s15   ;;  %s716_s14 = sphi %s753_s14, %s897_s14   ;;  %s712_s13 = sphi %s751_s13, %s896_s13   ;;  %s708_s12 = sphi %s749_s12, %s895_s12  }
   0x5   : > { %s774_s18 = sadd.s32 1, %s720_s15   ;;  %s97_s19 = sadd.s32 1, %s716_s14 }
   0x6   : > { %s94_s20 = ssub.s32 %s720_s15, %s774_s18  ;;  %p107_p0 = scmp.ne.s32.totalorder %s716_s14, %s712_s13 }
   0x7   : > { %p95_p1 = scmp.eq.s32.totalorder %s94_s20, 0  ;;  %p108_p2 = scmp.eq.s32.totalorder %s770_s16, 1 }
   0x8   : > { %p113_p3 = scmp.ne.s32.totalorder %s712_s13, %s708_s12  ;;  %p114_p4 = scmp.eq.s32.totalorder %s517_s17, 1 }
   0x9   : > { %s785_s21 = scalar_select %p95_p1, %s716_s14, %s97_s19  }
   0xa   : > { %p787_p5 = por %p108_p2, %p107_p0  ;;  %p791_p6 = por %p114_p4, %p113_p3 }
   0xb   : > { %p518_p7 = scmp.ge.s32.totalorder %s720_s15, 1  ;;  %p121_p8 = scmp.lt.s32.totalorder %s720_s15, 3 }
   0xc   : > { %s892_s23 = scalar_select %p791_p6, 1, 0 }
   0xd   : > { %p584_p9 = scmp.eq.s32.totalorder %s770_s16, 0  ;;  %p798_p10 = pnand %p518_p7, %p121_p8 }
   0xe   : > { %s722_s25 = smov [#allocation2]  }
   0xf   : > { %s133_s26 = sshll.u32 %s722_s25, 4  ;;  %p576_p11 = pneg %p798_p10  ;;  %s134_s26 = int_to_ptr.vmem [resolvable:$true] %s133_s26 }
  0x10   : > { %s641_s27 = scalar_lea.vmem %s134_s26, 512  ;;  %p649_p3 = scmp.lt.s32.totalorder %s134_s26, %s134_s26 }
  0x11   : > { %p577_p12 = pnand %p584_p9, %p576_p11  ;;  %p642_p0 = scmp.ne.s32.totalorder %s134_s26, %s641_s27 }
  0x12   : > { %p650_p4 = scmp.lt.s32.totalorder %s641_s27, %s641_s27 }
  0x13   : > { %p632_p13 = pneg %p577_p12 }
  0x14   : > { %p651_p6 = por %p650_p4, %p649_p3 }
  0x15   : > { %p644_p1 = pnand %p642_p0, %p632_p13 }
  0x17   : > { %p645_p2 = pneg %p644_p1 }
  0x19   : > { %p652_p7 = pnand %p651_p6, %p645_p2 }
  0x1b   : > { %655 = shalt.err (!%p652_p7)
}
  0x1c   : > { %s723_s28 = smov 128   ;;  %s724_s29 = smov 8  }
  0x1d   : > { %579 = dma.hbm_to_vmem [thread:$0]  (!%p577_p12), %s889_s2, 512, %s134_s26, [#allocation3], %s723_s28, %s723_s28, %s724_s29  }
  0x1e   : > { %163 = sbr.rel (%p798_p10) target bundleno = 640 (0x280), region = 32 }
  0x23   : > { %699 = dma.done.wait (%p584_p9), [#allocation3], 512  }
  0x24   : > { %701 = vsyncadd (%p584_p9), [#allocation3], 4294966784  ;;  %p189_p8 = scmp.lt.s32.totalorder %s770_s16, 1  ;;  %v725_v0 = vmov 0   ;;  %vm204_vm0 = vcmask 261120   ;;  %v214_v3 = vld [vmem:[#allocation2 + $0x18] sm:$0xff]  ;;  %v199_v11 = vlaneseq }
  0x25   : > { %625 = vset.pattern.permute.xlu0 %v725_v0  ;;  %v726_v4 = vmov 0.0   ;;  %v213_v5 = vld [vmem:[#allocation2 + $0x10] sm:$0xff]  ;;  %vm727_vm1 = vmmov 0   ;;  %v212_v6 = vld [vmem:[#allocation2 + $0x8] sm:$0xff]  ;;  %v211_v8 = vld [vmem:[#allocation2] sm:$0xff]  ;;  %s525_s19 = sshll.u32 %s770_s16, 3 }
  0x26   : > { %s190_s5 = scalar_select %p189_p8, %s770_s16, 1  ;;  %542 = vmatprep.subr.mxu0 %v726_v4  ;;  %550 = vmatprep.mubr.msk.f32.mxu0 %vm727_vm1, %v726_v4  ;;  %v837_v13 = vand.u32 127, %v199_v11  ;;  %v200_v22 = vshrl.u32 %v199_v11, 7  ;;  %v201_v23 = vstv %s525_s19  ;;  %vm382_vm6 = vcmask 7168  }
  0x27   : > { %543 = vmatpush3.msra.mxu0 %v214_v3  ;;  %553 = vmatprep.subr.mxu1 %v726_v4  ;;  %s187_s20 = sand.u32 1, %s712_s13   ;;  %s529_s26 = sshll.u32 %s770_s16, 4 }
  0x28   : > { %s523_s6 = sshll.u32 %s190_s5, 3  ;;  %544 = vmatprep.subr.mxu0 %v726_v4  ;;  %554 = vmatpush3.msra.mxu1 %v214_v3  ;;  %v202_v24 = vadd.s32 %v201_v23, %v200_v22  ;;  %vm417_vm7 = vcmp.eq.s32.totalorder %v837_v13, 2  ;;  %vm416_vm8 = vcmp.eq.s32.totalorder %v837_v13, 1  ;;  %s188_s28 = scalar_lea.vmem [#allocation5], %s187_s20  ;;  %vm415_vm9 = vcmp.eq.s32.totalorder %v837_v13, 0 }
  0x29   : > { %s192_s9 = scalar_lea.vmem %s887_s0, %s523_s6  ;;  %s196_s17 = scalar_lea.vmem %s888_s1, %s523_s6  ;;  %545 = vmatpush3.msra.mxu0 %v213_v5  ;;  %555 = vmatprep.subr.mxu1 %v726_v4 }
  0x2a   : > { %v197_v1 = vld [vmem:[%s192_s9] sm:$0xff]  ;;  %546 = vmatprep.subr.mxu0 %v726_v4  ;;  %556 = vmatpush3.msra.mxu1 %v213_v5  ;;  %vm203_vm4 = vcmp.lt.s32.totalorder %v202_v24, 16  ;;  %s438_s29 = sshll.u32 %s188_s28, 4  ;;  %s852_s5 = scalar_lea.hbm %s890_s3, %s529_s26  ;;  %s439_s29 = int_to_ptr.vmem [resolvable:$true] %s438_s29 }
  0x2b   : > { %v205_v2 = vsel %vm204_vm0, %v197_v1, -inf  ;;  %v367_v7 = vld [vmem:[%s196_s17] sm:$0xff]  ;;  %547 = vmatpush3.msra.mxu0 %v212_v6  ;;  %557 = vmatprep.subr.mxu1 %v726_v4  ;;  %s426_s16 = scalar_lea.sflag [#allocation4], %s187_s20  ;;  %s656_s6 = scalar_lea.vmem %s439_s29, 16 }
  0x2c   : > { %206 = vmax.xlane.f32.xlu0 %v205_v2  ;;  %548 = vmatprep.subr.mxu0 %v726_v4  ;;  %vm378_vm3 = vcmp.ne.s32.totalorder %v367_v7, 4294967196  ;;  %p657_p6 = scmp.ne.s32.totalorder %s439_s29, %s656_s6  ;;  %s728_s7 = smov [#allocation5]  }
  0x2d   : > { %558 = vmatpush3.msra.mxu1 %v212_v6  ;;  %549 = vmatpush3.msra.mxu0 %v211_v8  ;;  %vm379_vm5 = vmand %vm378_vm3, %vm203_vm4  ;;  %s660_s8 = sshll.u32 %s728_s7, 4  ;;  %s661_s8 = int_to_ptr.vmem [resolvable:$false] %s660_s8 }
  0x2e   : > { %559 = vmatprep.subr.mxu1 %v726_v4  ;;  %561 = vmatprep.mubr.msk.f32.mxu1 %vm727_vm1, %v726_v4  ;;  %v528_v35 = vsel %vm379_vm5, 1.0, %v726_v4  ;;  %p658_p9 = pnand %p657_p6, %p787_p5  ;;  %s662_s9 = scalar_lea.vmem %s661_s8, 32 }
  0x2f   : > { %560 = vmatpush3.msra.mxu1 %v211_v8  ;;  %v405_v37 = vsel %vm382_vm6, %v528_v35, 0.0  ;;  %p663_p11 = scmp.lt.s32.totalorder %s439_s29, %s661_s8  ;;  %p664_p12 = scmp.lt.s32.totalorder %s662_s9, %s656_s6 }
  0x30   : > { %562 = vmatmul.mubr.msk.f32.vlgmr.msra.gmra.mxu1 %vm204_vm0, %v197_v1  ;;  %p659_p10 = pneg %p658_p9 }
  0x31   : > { %p665_p13 = por %p664_p12, %p663_p11 }
  0x33   : > { %p666_p0 = pnand %p665_p13, %p659_p10 }
  0x42   : > { %371 = vperm.xlu0 %625, %v367_v7  }
  0xb5   : > { %v207_v9 = vpop.xlane.xlu0 %206 }
  0xb6   : > { %v208_v10 = vsub.f32 %v197_v1, %v207_v9 }
  0xb8   : > { %v209_v12 = vmul.f32 1.442695, %v208_v10 }
  0xba   : > { %626 = vpow2.f32 %v209_v12 }
  0xbd   : > { %v372_v14 = vpop.permute.xlu0 %371 }
  0xbe   : > { %vm373_vm2 = vcmp.eq.s32.totalorder %v837_v13, %v372_v14 }
  0xbf   : > { %v374_v15 = vsel %vm373_vm2, %v197_v1, -inf }
  0xc0   : > { %v375_v16 = vsel %vm204_vm0, %v374_v15, -inf }
  0xc1   : > { %376 = vmax.xlane.f32.xlu1 %v375_v16 }
  0xc7   : > { %v627_v17 = vpop.eup %626 }
  0xc8   : > { %551 = vmatmul.mubr.msk.f32.vlgmr.msra.gmra.mxu0 %vm204_vm0, %v627_v17 }
  0xf0   : > { %v357_v18 = vpop.f32.mrf.mxu1 }
  0xf2   : > { %v563_v19 = vpop.f32.mrf.mxu1 }
 0x14a   : > { %v377_v27 = vpop.xlane.xlu1 %376 }
 0x188   : > { %v284_v20 = vpop.f32.mrf.mxu0 }
 0x189   : > { %628 = vlog2.f32 %v284_v20 }
 0x18a   : > { %v552_v21 = vpop.f32.mrf.mxu0 }
 0x196   : > { %v629_v25 = vpop.eup %628 }
 0x197   : > { %v362_v26 = vmul.f32 0.6931472, %v629_v25 }
 0x199   : > { %v363_v28 = vadd.f32 %v362_v26, %v207_v9 }
 0x19b   : > { %v380_v29 = vsub.f32 %v363_v28, %v377_v27  ;;  %v364_v30 = vmul.f32 32.0, %v363_v28 }
 0x19d   : > { %v365_v31 = vsub.f32 %v364_v30, %v357_v18  ;;  %v381_v32 = vsel %vm379_vm5, %v380_v29, 0.0 }
 0x19e   : > { %v393_v33 = vsel %vm382_vm6, %v381_v32, 0.0 }
 0x19f   : > { %394 = vadd.xlane.f32.xlu1 %v393_v33  ;;  %v366_v34 = vsel %vm203_vm4, %v365_v31, 0.0 }
 0x1a0   : > { %v383_v36 = vsel %vm382_vm6, %v366_v34, 0.0 }
 0x1a3   : > { %384 = vadd.xlane.f32.xlu1 %v383_v36 }
 0x1a7   : > { %406 = vadd.xlane.f32.xlu1 %v405_v37 }
 0x228   : > { %v395_v38 = vpop.xlane.xlu1 %394 }
 0x229   : > { %v396_v39 = vrot.slane %v395_v38, 4 }
 0x22b   : > { %v397_v40 = vadd.f32 %v396_v39, %v395_v38 }
 0x22c   : > { %v385_v41 = vpop.xlane.xlu1 %384 }
 0x22d   : > { %v398_v42 = vrot.slane %v397_v40, 2  ;;  %v386_v43 = vrot.slane %v385_v41, 4 }
 0x22f   : > { %v387_v44 = vadd.f32 %v386_v43, %v385_v41  ;;  %v399_v46 = vadd.f32 %v398_v42, %v397_v40 }
 0x230   : > { %v407_v45 = vpop.xlane.xlu1 %406 }
 0x231   : > { %v388_v47 = vrot.slane %v387_v44, 2  ;;  %v408_v48 = vrot.slane %v407_v45, 4  ;;  %v400_v51 = vrot.slane %v399_v46, 1 }
 0x233   : > { %v409_v49 = vadd.f32 %v408_v48, %v407_v45  ;;  %v389_v50 = vadd.f32 %v388_v47, %v387_v44  ;;  %v401_v56 = vadd.f32 %v400_v51, %v399_v46 }
 0x235   : > { %v410_v52 = vrot.slane %v409_v49, 2  ;;  %v390_v53 = vrot.slane %v389_v50, 1 }
 0x237   : > { %v411_v54 = vadd.f32 %v410_v52, %v409_v49  ;;  %v391_v55 = vadd.f32 %v390_v53, %v389_v50 }
 0x239   : > { %564 = vpush %v391_v55  ;;  %v412_v57 = vrot.slane %v411_v54, 1 }
 0x23a   : > { %566 = vpush %v401_v56 }
 0x23b   : > { %v413_v58 = vadd.f32 %v412_v57, %v411_v54 }
 0x23d   : > { %568 = vpush %v413_v58 }
 0x26a   : > { %s565_s24 = spop %564 }
 0x26b   : > { %s567_s25 = spop %566  ;;  %v422_v62 = vstv %s565_s24 }
 0x26c   : > { %v420_v60 = vstv %s567_s25 }
 0x26e   : > { %s569_s27 = spop %568 }
 0x26f   : > { %v418_v59 = vstv %s569_s27 }
 0x270   : > { %v419_v61 = vsel %vm417_vm7, %v418_v59, 0.0 }
 0x271   : > { %v421_v63 = vsel %vm416_vm8, %v420_v60, %v419_v61 }
 0x272   : > { %v423_v0 = vsel %vm415_vm9, %v422_v62, %v421_v63 }
 0x273   : > { %424 = vst [vmem:[%s188_s28] sm:$0x1] %v423_v0 }
 0x274   : > { %669 = shalt.err (!%p666_p0)
}
 0x275   : > { %s670_s10 = scalar_lea.hbm %s852_s5, 16  ;;  %s674_s19 = scalar_lea.hbm %s890_s3, 32 }
 0x276   : > { %p671_p1 = scmp.ne.s32.totalorder %s852_s5, %s670_s10  ;;  %p675_p4 = scmp.lt.s32.totalorder %s852_s5, %s890_s3 }
 0x277   : > { %p676_p7 = scmp.lt.s32.totalorder %s674_s19, %s670_s10 }
 0x278   : > { %p672_p2 = pnand %p671_p1, %p787_p5 }
 0x279   : > { %p677_p8 = por %p676_p7, %p675_p4 }
 0x27a   : > { %p673_p3 = pneg %p672_p2 }
 0x27c   : > { %p678_p6 = pnand %p677_p8, %p673_p3 }
 0x27e   : > { %681 = shalt.err (!%p678_p6)
}
 0x27f   : > { %574 = dma.vmem_to_hbm [thread:$0]  (%p787_p5), %s439_s29, 16, %s852_s5, %s426_s16  }
 0x280 PF: > { %p586_p9 = scmp.ge.s32.totalorder %s720_s15, 2  ;;  %s450_s25 = sand.u32 1, %s708_s12  }
 0x281   : > { %p894_p10 = scmp.ne.s32.totalorder %s892_s23, 0  ;;  %s451_s26 = scalar_lea.sflag [#allocation4], %s450_s25 }
 0x283   : > { %p581_p11 = pnand %p586_p9, %p894_p10 }
 0x285   : > { %p582_p12 = pneg %p581_p11 }
 0x287   : > { %703 = dma.done.wait (%p582_p12), %s451_s26, 16  }
 0x288   : > { %705 = vsyncadd (%p582_p12), %s451_s26, 4294967280  ;;  %p14_p13 = scmp.ge.s32.totalorder %s774_s18, 4   ;;  %s895_s12 = smov %s712_s13 }
 0x289   : > { %s896_s13 = smov %s716_s14  ;;  %s897_s14 = smov %s785_s21 }
 0x28a   : > { %s898_s15 = smov %s774_s18  ;;  %16 = sbr.rel (!%p14_p13) target bundleno = 4 (0x4), region = 75 }
 0x28f   :  { %455 = vsyncpa [#allocation3], 1 }
 0x290   :  { %457 = vsyncpa [#allocation3 + $0x1], 1 }
 0x291   :  { %458 = vsyncpa [#allocation4], 1 }
 0x292   :  { %460 = vsyncpa [#allocation4 + $0x1], 1 }

</bundles_post_ra>
